<compile_context>
chip_gen: v7x
topology: tpu7x:2x2x1
jax: 0.10.0
libtpu: 0.0.40
codegen_flags: <defaults>
</compile_context>

<pallas_src>
import functools
import math

import jax
import jax.numpy as jnp
from jax.experimental import pallas as pl
from jax.experimental.pallas import tpu as pltpu


_MIB = 1024 * 1024
_VMEM_BUDGET_BYTES = 40 * _MIB      # target working set for tile sizing
_VMEM_LIMIT_CAP_BYTES = 48 * _MIB   # < 64 MiB physical VMEM on v7x
_MAX_BLOCK_Q = 512


def _sublane_multiple(itemsize):
    # f32 -> 8, bf16 -> 16, 8-bit -> 32 (sub-32-bit packs along sublanes).
    return 8 * max(1, 4 // itemsize)


def _vmem_working_set_bytes(block_q, Lk, dK, dV, in_itemsize, attw_itemsize,
                            kv_buffers):
    """Rough per-step resident-VMEM estimate for the chosen tiling."""
    kv = kv_buffers * Lk * (dK + dV) * in_itemsize      # K and V slabs
    q = 2 * block_q * dK * in_itemsize                  # double-buffered Q
    out = 2 * block_q * dV * in_itemsize                # double-buffered out
    attw = 2 * block_q * Lk * attw_itemsize             # double-buffered attw
    temps = 3 * block_q * Lk * 4                        # score / p / w in f32
    return kv + q + out + attw + temps


def _choose_block_q(Lq, Lk, dK, dV, in_itemsize, attw_itemsize, kv_buffers):
    """Largest shape-legal divisor of Lq (<= _MAX_BLOCK_Q) fitting the budget."""
    sublane = _sublane_multiple(in_itemsize)
    cap = min(Lq, _MAX_BLOCK_Q)
    fallback = Lq
    for d in range(cap, 0, -1):
        if Lq % d:
            continue
        # Blocks smaller than the full dim must be a sublane multiple to
        # satisfy the (8,128) BlockSpec constraint on the second-minor axis.
        if d != Lq and d % sublane:
            continue
        fallback = d  # smallest shape-legal divisor seen so far
        if _vmem_working_set_bytes(d, Lk, dK, dV, in_itemsize, attw_itemsize,
                                   kv_buffers) <= _VMEM_BUDGET_BYTES:
            return d
    # Nothing fits the budget (very large Lk): use the smallest legal tile.
    return fallback


def _attn_kernel(q_ref, k_ref, v_ref, out_ref, attw_ref, *, inv_temp,
                 matmul_dtype):
    # Refs with the batch dim squeezed: q (tq, dK), k (Lk, dK), v (Lk, dV).
    # Fold 1/sqrt(d_K) into Q (tq*dK elements instead of the tq*Lk score tile).
    q = (q_ref[...] * inv_temp).astype(matmul_dtype)
    k = k_ref[...].astype(matmul_dtype)

    # score = Q @ K^T: contract dK of Q against dK of K directly on the MXU
    # (no explicit K transpose / XLU pass), f32 accumulation -> (tq, Lk).
    score = jax.lax.dot_general(
        q, k,
        dimension_numbers=(((1,), (1,)), ((), ())),
        preferred_element_type=jnp.float32)

    # Numerically stable softmax over the key axis (torch dim=2).  Exact
    # division so the returned attention weights sum to 1.
    m = jnp.max(score, axis=-1, keepdims=True)
    p = jnp.exp(score - m)
    w = p / jnp.sum(p, axis=-1, keepdims=True)

    # Store the weights first, then feed the PV matmul from attw_ref so no
    # separate (tq, Lk) temp stays live across both uses.
    attw_ref[...] = w.astype(attw_ref.dtype)
    v = v_ref[...].astype(matmul_dtype)
    out_ref[...] = jnp.dot(
        attw_ref[...].astype(matmul_dtype), v,
        preferred_element_type=jnp.float32).astype(out_ref.dtype)


def scaled_dot_product_attention(Q, K, V, d_K, mask=None, *, block_q=None,
                                 attw_dtype=None, matmul_dtype=None):
    """Pallas equivalent of ScaledDotProductAttention.forward (eval mode).

    Q: [B, Lq, dK], K: [B, Lk, dK], V: [B, Lk, dV]
    Returns (output [B, Lq, dV], att_weights [B, Lq, Lk]).

    attw_dtype: dtype of the returned attention weights (default Q.dtype);
        bf16 halves the dominant quadratic HBM write if acceptable downstream.
    matmul_dtype: dtype of the MXU operands (default Q.dtype); bf16 with f32
        accumulation is the fast path on v6e/v7x.
    """
    assert mask is None, "TODO(synk): mask (masked_fill -inf) path not implemented"
    B, Lq, dK = Q.shape
    Bk, Lk, dKk = K.shape
    Bv, Lkv, dV = V.shape
    assert (B, dK) == (Bk, dKk) and (B, Lk) == (Bv, Lkv)

    in_dtype = jnp.dtype(Q.dtype)
    attw_dtype = in_dtype if attw_dtype is None else jnp.dtype(attw_dtype)
    matmul_dtype = in_dtype if matmul_dtype is None else jnp.dtype(matmul_dtype)

    in_itemsize = in_dtype.itemsize
    attw_itemsize = attw_dtype.itemsize
    inv_temp = 1.0 / math.sqrt(d_K)      # host-side math, no device round-trip

    kv_buffers = 1  # K/V single-buffered (block index only changes with b)

    if block_q is None:
        block_q = _choose_block_q(Lq, Lk, dK, dV, in_itemsize, attw_itemsize,
                                  kv_buffers)
    else:
        sublane = _sublane_multiple(in_itemsize)
        if block_q != Lq:
            assert Lq % block_q == 0 and block_q % sublane == 0, (
                f"block_q must divide Lq={Lq} and be a multiple of {sublane} "
                "(sublane packing) unless it equals Lq")
    num_q = Lq // block_q

    est = _vmem_working_set_bytes(block_q, Lk, dK, dV, in_itemsize,
                                  attw_itemsize, kv_buffers)
    vmem_limit = int(min(max(2 * est, 32 * _MIB), _VMEM_LIMIT_CAP_BYTES))

    kernel = functools.partial(_attn_kernel, inv_temp=inv_temp,
                               matmul_dtype=matmul_dtype)

    out_shapes = (
        jax.ShapeDtypeStruct((B, Lq, dV), Q.dtype),
        jax.ShapeDtypeStruct((B, Lq, Lk), attw_dtype),
    )

    # K/V are read once per batch (block index unchanged across qi, so Pallas
    # skips the DMA) -> no num_q factor on their bytes.
    cost = pl.CostEstimate(
        flops=2 * B * Lq * Lk * (dK + dV),
        transcendentals=B * Lq * Lk,
        bytes_accessed=(in_itemsize * (B * Lq * dK      # Q read
                                       + B * Lk * dK    # K read
                                       + B * Lk * dV    # V read
                                       + B * Lq * dV)   # out write
                        + attw_itemsize * B * Lq * Lk), # attw write
    )

    def build(kv_pipeline_mode):
        kv_kwargs = ({} if kv_pipeline_mode is None
                     else {"pipeline_mode": kv_pipeline_mode})
        grid_spec = pltpu.PrefetchScalarGridSpec(
            num_scalar_prefetch=0,
            grid=(B, num_q),
            in_specs=[
                # Leading batch dim squeezed (block dim None) -> 2-D refs.
                pl.BlockSpec((None, block_q, dK), lambda b, qi: (b, qi, 0)),
                pl.BlockSpec((None, Lk, dK), lambda b, qi: (b, 0, 0),
                             **kv_kwargs),
                pl.BlockSpec((None, Lk, dV), lambda b, qi: (b, 0, 0),
                             **kv_kwargs),
            ],
            out_specs=[
                pl.BlockSpec((None, block_q, dV), lambda b, qi: (b, qi, 0)),
                pl.BlockSpec((None, block_q, Lk), lambda b, qi: (b, qi, 0)),
            ],
        )
        return pl.pallas_call(
            kernel,
            out_shape=out_shapes,
            grid_spec=grid_spec,
            cost_estimate=cost,
            compiler_params=pltpu.CompilerParams(
                dimension_semantics=("parallel", "parallel"),
                vmem_limit_bytes=vmem_limit),
        )

    try:
        # Single-buffer K/V: their block index only changes with the outer
        # batch axis, so the second buffer only buys overlap at batch
        # boundaries; dropping it saves Lk*(dK+dV)*itemsize of VMEM.
        return build(pl.Buffered(1))(Q, K, V)
    except Exception:
        # Fallback for environments where single-buffering via pipeline_mode
        # is unavailable: default double-buffering (correctness identical).
        return build(None)(Q, K, V)


def _reference(Q, K, V, d_K):
    score = jnp.einsum("bqd,bkd->bqk", Q, K,
                       preferred_element_type=jnp.float32) / math.sqrt(d_K)
    w = jax.nn.softmax(score, axis=2)
    out = jnp.einsum("bqk,bkd->bqd", w, V, preferred_element_type=jnp.float32)
    return out.astype(Q.dtype), w


if __name__ == "__main__":
    key = jax.random.PRNGKey(0)

    # Case 1: small shapes consistent with the module's bmm semantics.
    B, Lq, Lk, dK, dV = 2, 8, 8, 32, 32
    kq, kk, kv = jax.random.split(key, 3)
    Q = jax.random.normal(kq, (B, Lq, dK), dtype=jnp.float32)
    K = jax.random.normal(kk, (B, Lk, dK), dtype=jnp.float32)
    V = jax.random.normal(kv, (B, Lk, dV), dtype=jnp.float32)

    out, attw = scaled_dot_product_attention(Q, K, V, d_K=dK)
    out = jax.block_until_ready(out)
    attw = jax.block_until_ready(attw)

    ref_out, ref_w = _reference(Q, K, V, dK)
    assert out.shape == (B, Lq, dV) and attw.shape == (B, Lq, Lk)
    assert jnp.allclose(out, ref_out, atol=1e-4, rtol=1e-4)
    assert jnp.allclose(attw, ref_w, atol=1e-4, rtol=1e-4)
    assert jnp.allclose(jnp.sum(attw, axis=-1), 1.0, atol=1e-5)

    # Case 2: exercise the tiled-Lq path (num_q > 1).
    B2, Lq2, Lk2, dK2, dV2 = 2, 16, 16, 32, 32
    kq2, kk2, kv2 = jax.random.split(jax.random.PRNGKey(1), 3)
    Q2 = jax.random.normal(kq2, (B2, Lq2, dK2), dtype=jnp.float32)
    K2 = jax.random.normal(kk2, (B2, Lk2, dK2), dtype=jnp.float32)
    V2 = jax.random.normal(kv2, (B2, Lk2, dV2), dtype=jnp.float32)

    out2, attw2 = scaled_dot_product_attention(Q2, K2, V2, d_K=dK2, block_q=8)
    out2 = jax.block_until_ready(out2)
    attw2 = jax.block_until_ready(attw2)

    ref_out2, ref_w2 = _reference(Q2, K2, V2, dK2)
    assert jnp.allclose(out2, ref_out2, atol=1e-4, rtol=1e-4)
    assert jnp.allclose(attw2, ref_w2, atol=1e-4, rtol=1e-4)

    print("KERNEL_OK")
</pallas_src>

<mosaic_0001>
module attributes {stable_mosaic.version = 11 : i64} {
  func.func @_attn_kernel(%arg0: i32, %arg1: i32, %arg2: memref<1x8x32xf32, #tpu.memory_space<vmem>>, %arg3: memref<1x8x32xf32, #tpu.memory_space<vmem>>, %arg4: memref<1x8x32xf32, #tpu.memory_space<vmem>>, %arg5: memref<1x8x32xf32, #tpu.memory_space<vmem>>, %arg6: memref<1x8x8xf32, #tpu.memory_space<vmem>>) attributes {dimension_semantics = [#tpu.dimension_semantics<parallel>, #tpu.dimension_semantics<parallel>], iteration_bounds = array<i64: 2, 1>, scalar_prefetch = 0 : i64, scratch_operands = 0 : i64, tpu.core_type = #tpu.core_type<tc>, window_params = [{transform_indices = @transform_0, window_bounds = array<i64: 1, 8, 32>}, {pipeline_mode = #tpu.pipeline_mode<synchronous>, transform_indices = @transform_1, window_bounds = array<i64: 1, 8, 32>}, {pipeline_mode = #tpu.pipeline_mode<synchronous>, transform_indices = @transform_2, window_bounds = array<i64: 1, 8, 32>}, {transform_indices = @transform_3, window_bounds = array<i64: 1, 8, 32>}, {transform_indices = @transform_4, window_bounds = array<i64: 1, 8, 8>}]} {
    %c0 = arith.constant 0 : index
    %c0_0 = arith.constant 0 : index
    %c0_1 = arith.constant 0 : index
    %0 = vector.load %arg2[%c0, %c0_0, %c0_1] : memref<1x8x32xf32, #tpu.memory_space<vmem>>, vector<1x8x32xf32>
    %1 = vector.shape_cast %0 : vector<1x8x32xf32> to vector<8x32xf32>
    %cst = arith.constant 0.176776692 : f32
    %2 = vector.broadcast %cst : f32 to vector<8x32xf32>
    %3 = arith.mulf %1, %2 : vector<8x32xf32>
    %c0_2 = arith.constant 0 : index
    %c0_3 = arith.constant 0 : index
    %c0_4 = arith.constant 0 : index
    %4 = vector.load %arg3[%c0_2, %c0_3, %c0_4] : memref<1x8x32xf32, #tpu.memory_space<vmem>>, vector<1x8x32xf32>
    %5 = vector.shape_cast %4 : vector<1x8x32xf32> to vector<8x32xf32>
    %cst_5 = arith.constant dense<0.000000e+00> : vector<8x8xf32>
    %6 = tpu.matmul %3, %5, %cst_5 {dimension_numbers = #tpu.dot_dimension_numbers<[1], [1], [0], [0], [0, 0, 1, 0], [], []>} : vector<8x32xf32>, vector<8x32xf32>, vector<8x8xf32> -> vector<8x8xf32>
    %cst_6 = arith.constant dense<0xFF800000> : vector<8xf32>
    %7 = vector.multi_reduction <maximumf>, %6, %cst_6 [1] : vector<8x8xf32> to vector<8xf32>
    %8 = vector.shape_cast %7 : vector<8xf32> to vector<8x1xf32>
    %9 = vector.broadcast %8 : vector<8x1xf32> to vector<8x8xf32>
    %10 = arith.subf %6, %9 : vector<8x8xf32>
    %11 = math.exp %10 : vector<8x8xf32>
    %cst_7 = arith.constant dense<0.000000e+00> : vector<8xf32>
    %12 = vector.multi_reduction <add>, %11, %cst_7 [1] : vector<8x8xf32> to vector<8xf32>
    %13 = vector.shape_cast %12 : vector<8xf32> to vector<8x1xf32>
    %14 = vector.broadcast %13 : vector<8x1xf32> to vector<8x8xf32>
    %15 = arith.divf %11, %14 : vector<8x8xf32>
    %c0_8 = arith.constant 0 : index
    %c0_9 = arith.constant 0 : index
    %c0_10 = arith.constant 0 : index
    %16 = vector.load %arg6[%c0_8, %c0_9, %c0_10] : memref<1x8x8xf32, #tpu.memory_space<vmem>>, vector<1x8x8xf32>
    %17 = vector.shape_cast %16 : vector<1x8x8xf32> to vector<8x8xf32>
    %18 = vector.shape_cast %15 : vector<8x8xf32> to vector<1x8x8xf32>
    tpu.vector_store %arg6[%c0_8, %c0_9, %c0_10], %18 {strides = array<i32>} : memref<1x8x8xf32, #tpu.memory_space<vmem>>, vector<1x8x8xf32>,
    %c0_11 = arith.constant 0 : index
    %c0_12 = arith.constant 0 : index
    %c0_13 = arith.constant 0 : index
    %19 = vector.load %arg4[%c0_11, %c0_12, %c0_13] : memref<1x8x32xf32, #tpu.memory_space<vmem>>, vector<1x8x32xf32>
    %20 = vector.shape_cast %19 : vector<1x8x32xf32> to vector<8x32xf32>
    %c0_14 = arith.constant 0 : index
    %c0_15 = arith.constant 0 : index
    %c0_16 = arith.constant 0 : index
    %21 = vector.load %arg6[%c0_14, %c0_15, %c0_16] : memref<1x8x8xf32, #tpu.memory_space<vmem>>, vector<1x8x8xf32>
    %22 = vector.shape_cast %21 : vector<1x8x8xf32> to vector<8x8xf32>
    %cst_17 = arith.constant dense<0.000000e+00> : vector<8x32xf32>
    %23 = tpu.matmul %22, %20, %cst_17 {dimension_numbers = #tpu.dot_dimension_numbers<[1], [0], [0], [1], [0, 0, 1, 1], [], []>} : vector<8x8xf32>, vector<8x32xf32>, vector<8x32xf32> -> vector<8x32xf32>
    %c0_18 = arith.constant 0 : index
    %c0_19 = arith.constant 0 : index
    %c0_20 = arith.constant 0 : index
    %24 = vector.load %arg5[%c0_18, %c0_19, %c0_20] : memref<1x8x32xf32, #tpu.memory_space<vmem>>, vector<1x8x32xf32>
    %25 = vector.shape_cast %24 : vector<1x8x32xf32> to vector<8x32xf32>
    %26 = vector.shape_cast %23 : vector<8x32xf32> to vector<1x8x32xf32>
    tpu.vector_store %arg5[%c0_18, %c0_19, %c0_20], %26 {strides = array<i32>} : memref<1x8x32xf32, #tpu.memory_space<vmem>>, vector<1x8x32xf32>,
    return
  }
  func.func @transform_0(%arg0: i32, %arg1: i32) -> (i32, i32, i32) {
    %c0_i32 = arith.constant 0 : i32
    %c0_i32_0 = arith.constant 0 : i32
    return %arg0, %arg1, %c0_i32 : i32, i32, i32
  }
  func.func @transform_1(%arg0: i32, %arg1: i32) -> (i32, i32, i32) {
    %c0_i32 = arith.constant 0 : i32
    %c0_i32_0 = arith.constant 0 : i32
    %c0_i32_1 = arith.constant 0 : i32
    return %arg0, %c0_i32, %c0_i32_0 : i32, i32, i32
  }
  func.func @transform_2(%arg0: i32, %arg1: i32) -> (i32, i32, i32) {
    %c0_i32 = arith.constant 0 : i32
    %c0_i32_0 = arith.constant 0 : i32
    %c0_i32_1 = arith.constant 0 : i32
    return %arg0, %c0_i32, %c0_i32_0 : i32, i32, i32
  }
  func.func @transform_3(%arg0: i32, %arg1: i32) -> (i32, i32, i32) {
    %c0_i32 = arith.constant 0 : i32
    %c0_i32_0 = arith.constant 0 : i32
    return %arg0, %arg1, %c0_i32 : i32, i32, i32
  }
  func.func @transform_4(%arg0: i32, %arg1: i32) -> (i32, i32, i32) {
    %c0_i32 = arith.constant 0 : i32
    %c0_i32_0 = arith.constant 0 : i32
    return %arg0, %arg1, %c0_i32 : i32, i32, i32
  }
}

module attributes {stable_mosaic.version = 11 : i64} {
  func.func @_attn_kernel(%arg0: i32, %arg1: i32, %arg2: memref<1x8x32xf32, #tpu.memory_space<vmem>>, %arg3: memref<1x8x32xf32, #tpu.memory_space<vmem>>, %arg4: memref<1x8x32xf32, #tpu.memory_space<vmem>>, %arg5: memref<1x8x32xf32, #tpu.memory_space<vmem>>, %arg6: memref<1x8x8xf32, #tpu.memory_space<vmem>>) attributes {dimension_semantics = [#tpu.dimension_semantics<parallel>, #tpu.dimension_semantics<parallel>], iteration_bounds = array<i64: 2, 1>, scalar_prefetch = 0 : i64, scratch_operands = 0 : i64, tpu.core_type = #tpu.core_type<tc>, window_params = [{transform_indices = @transform_0, window_bounds = array<i64: 1, 8, 32>}, {transform_indices = @transform_1, window_bounds = array<i64: 1, 8, 32>}, {transform_indices = @transform_2, window_bounds = array<i64: 1, 8, 32>}, {transform_indices = @transform_3, window_bounds = array<i64: 1, 8, 32>}, {transform_indices = @transform_4, window_bounds = array<i64: 1, 8, 8>}]} {
    %c0 = arith.constant 0 : index
    %c0_0 = arith.constant 0 : index
    %c0_1 = arith.constant 0 : index
    %0 = vector.load %arg2[%c0, %c0_0, %c0_1] : memref<1x8x32xf32, #tpu.memory_space<vmem>>, vector<1x8x32xf32>
    %1 = vector.shape_cast %0 : vector<1x8x32xf32> to vector<8x32xf32>
    %cst = arith.constant 0.176776692 : f32
    %2 = vector.broadcast %cst : f32 to vector<8x32xf32>
    %3 = arith.mulf %1, %2 : vector<8x32xf32>
    %c0_2 = arith.constant 0 : index
    %c0_3 = arith.constant 0 : index
    %c0_4 = arith.constant 0 : index
    %4 = vector.load %arg3[%c0_2, %c0_3, %c0_4] : memref<1x8x32xf32, #tpu.memory_space<vmem>>, vector<1x8x32xf32>
    %5 = vector.shape_cast %4 : vector<1x8x32xf32> to vector<8x32xf32>
    %cst_5 = arith.constant dense<0.000000e+00> : vector<8x8xf32>
    %6 = tpu.matmul %3, %5, %cst_5 {dimension_numbers = #tpu.dot_dimension_numbers<[1], [1], [0], [0], [0, 0, 1, 0], [], []>} : vector<8x32xf32>, vector<8x32xf32>, vector<8x8xf32> -> vector<8x8xf32>
    %cst_6 = arith.constant dense<0xFF800000> : vector<8xf32>
    %7 = vector.multi_reduction <maximumf>, %6, %cst_6 [1] : vector<8x8xf32> to vector<8xf32>
    %8 = vector.shape_cast %7 : vector<8xf32> to vector<8x1xf32>
    %9 = vector.broadcast %8 : vector<8x1xf32> to vector<8x8xf32>
    %10 = arith.subf %6, %9 : vector<8x8xf32>
    %11 = math.exp %10 : vector<8x8xf32>
    %cst_7 = arith.constant dense<0.000000e+00> : vector<8xf32>
    %12 = vector.multi_reduction <add>, %11, %cst_7 [1] : vector<8x8xf32> to vector<8xf32>
    %13 = vector.shape_cast %12 : vector<8xf32> to vector<8x1xf32>
    %14 = vector.broadcast %13 : vector<8x1xf32> to vector<8x8xf32>
    %15 = arith.divf %11, %14 : vector<8x8xf32>
    %c0_8 = arith.constant 0 : index
    %c0_9 = arith.constant 0 : index
    %c0_10 = arith.constant 0 : index
    %16 = vector.load %arg6[%c0_8, %c0_9, %c0_10] : memref<1x8x8xf32, #tpu.memory_space<vmem>>, vector<1x8x8xf32>
    %17 = vector.shape_cast %16 : vector<1x8x8xf32> to vector<8x8xf32>
    %18 = vector.shape_cast %15 : vector<8x8xf32> to vector<1x8x8xf32>
    tpu.vector_store %arg6[%c0_8, %c0_9, %c0_10], %18 {strides = array<i32>} : memref<1x8x8xf32, #tpu.memory_space<vmem>>, vector<1x8x8xf32>,
    %c0_11 = arith.constant 0 : index
    %c0_12 = arith.constant 0 : index
    %c0_13 = arith.constant 0 : index
    %19 = vector.load %arg4[%c0_11, %c0_12, %c0_13] : memref<1x8x32xf32, #tpu.memory_space<vmem>>, vector<1x8x32xf32>
    %20 = vector.shape_cast %19 : vector<1x8x32xf32> to vector<8x32xf32>
    %c0_14 = arith.constant 0 : index
    %c0_15 = arith.constant 0 : index
    %c0_16 = arith.constant 0 : index
    %21 = vector.load %arg6[%c0_14, %c0_15, %c0_16] : memref<1x8x8xf32, #tpu.memory_space<vmem>>, vector<1x8x8xf32>
    %22 = vector.shape_cast %21 : vector<1x8x8xf32> to vector<8x8xf32>
    %cst_17 = arith.constant dense<0.000000e+00> : vector<8x32xf32>
    %23 = tpu.matmul %22, %20, %cst_17 {dimension_numbers = #tpu.dot_dimension_numbers<[1], [0], [0], [1], [0, 0, 1, 1], [], []>} : vector<8x8xf32>, vector<8x32xf32>, vector<8x32xf32> -> vector<8x32xf32>
    %c0_18 = arith.constant 0 : index
    %c0_19 = arith.constant 0 : index
    %c0_20 = arith.constant 0 : index
    %24 = vector.load %arg5[%c0_18, %c0_19, %c0_20] : memref<1x8x32xf32, #tpu.memory_space<vmem>>, vector<1x8x32xf32>
    %25 = vector.shape_cast %24 : vector<1x8x32xf32> to vector<8x32xf32>
    %26 = vector.shape_cast %23 : vector<8x32xf32> to vector<1x8x32xf32>
    tpu.vector_store %arg5[%c0_18, %c0_19, %c0_20], %26 {strides = array<i32>} : memref<1x8x32xf32, #tpu.memory_space<vmem>>, vector<1x8x32xf32>,
    return
  }
  func.func @transform_0(%arg0: i32, %arg1: i32) -> (i32, i32, i32) {
    %c0_i32 = arith.constant 0 : i32
    %c0_i32_0 = arith.constant 0 : i32
    return %arg0, %arg1, %c0_i32 : i32, i32, i32
  }
  func.func @transform_1(%arg0: i32, %arg1: i32) -> (i32, i32, i32) {
    %c0_i32 = arith.constant 0 : i32
    %c0_i32_0 = arith.constant 0 : i32
    %c0_i32_1 = arith.constant 0 : i32
    return %arg0, %c0_i32, %c0_i32_0 : i32, i32, i32
  }
  func.func @transform_2(%arg0: i32, %arg1: i32) -> (i32, i32, i32) {
    %c0_i32 = arith.constant 0 : i32
    %c0_i32_0 = arith.constant 0 : i32
    %c0_i32_1 = arith.constant 0 : i32
    return %arg0, %c0_i32, %c0_i32_0 : i32, i32, i32
  }
  func.func @transform_3(%arg0: i32, %arg1: i32) -> (i32, i32, i32) {
    %c0_i32 = arith.constant 0 : i32
    %c0_i32_0 = arith.constant 0 : i32
    return %arg0, %arg1, %c0_i32 : i32, i32, i32
  }
  func.func @transform_4(%arg0: i32, %arg1: i32) -> (i32, i32, i32) {
    %c0_i32 = arith.constant 0 : i32
    %c0_i32_0 = arith.constant 0 : i32
    return %arg0, %arg1, %c0_i32 : i32, i32, i32
  }
}

</mosaic_0001>

<bundles_post_ra>
// kernel: tpu_custom_call.1
= control target key start
LH: loop header
LB: loop body
LE: loop exit
PB: predicated region body
PF: predicated region fallthrough
CT: control target
= control target key end

     0   :  { %10 = vsyncpa [#allocation3], 0  ;;  %s1267_s0 = inlined_call_operand.hbm [shape: f32[2,8,32], index: 0, kind: input, shape index: {}]   ;;  %s1268_s1 = inlined_call_operand.hbm [shape: f32[2,8,32], index: 1, kind: input, shape index: {}]   ;;  %s1269_s2 = inlined_call_operand.hbm [shape: f32[2,8,32], index: 2, kind: input, shape index: {}]   ;;  %s1270_s3 = inlined_call_operand.hbm [shape: f32[2,8,32], index: 3, kind: output, shape index: {0}]   ;;  %s1271_s4 = inlined_call_operand.hbm [shape: f32[2,8,8], index: 4, kind: output, shape index: {1}]  }
   0x1   :  { %12 = vsyncpa [#allocation3 + $0x1], 0 }
   0x2   :  { %13 = vsyncpa [#allocation6], 0 }
   0x3   :  { %14 = vsyncpa [#allocation4], 0 }
   0x4   :  { %16 = vsyncpa [#allocation4 + $0x1], 0 }
   0x5   :  { %17 = vsyncpa [#allocation10], 0 }
   0x6   :  { %19 = vsyncpa [#allocation10 + $0x1], 0  ;;  %s984_s15 = smov 0   ;;  %s986_s16 = smov 0  }
   0x7   :  { %s988_s17 = smov 0   ;;  %s990_s18 = smov 0  }
   0x8   :  { %s992_s19 = smov 0   ;;  %s994_s20 = smov 0  }
   0x9 LB: > { %s621_s21 = sadd.s32 4294967295, %s950_s20   ;;  %s622_s22 = sadd.s32 4294967294, %s950_s20   ;;  %s950_s20 = sphi %s994_s20, %s25_s20   ;;  %s946_s19 = sphi %s992_s19, %s1291_s19   ;;  %s942_s18 = sphi %s990_s18, %s1290_s18   ;;  %s938_s17 = sphi %s988_s17, %s1289_s17   ;;  %s934_s16 = sphi %s986_s16, %s1288_s16   ;;  %s930_s15 = sphi %s984_s15, %s1287_s15  }
   0xa   : > { %p59_p0 = scmp.ne.s32.totalorder %s934_s16, %s930_s15  ;;  %p60_p1 = scmp.eq.s32.totalorder %s621_s21, 0 }
   0xb   : > { %p1016_p2 = scmp.eq.s32.totalorder %s621_s21, 1  ;;  %p143_p3 = scmp.eq.s32.totalorder %s622_s22, 1 }
   0xc   : > { %p1020_p4 = por %p60_p1, %p59_p0  ;;  %p623_p5 = scmp.ge.s32.totalorder %s950_s20, 1 }
   0xd   : > { %s1275_s23 = scalar_select %p1016_p2, 1, 0 }
   0xe   : > { %s1276_s24 = scalar_select %p1020_p4, 1, 0 }
   0xf   : > { %p1025_p6 = por %p143_p3, %p59_p0  ;;  %p178_p7 = scmp.lt.s32.totalorder %s950_s20, 3 }
  0x10   : > { %s1030_s26 = sshll.u32 %s942_s18, 7  ;;  %s952_s5 = smov [#allocation5]  }
  0x11   : > { %s1277_s25 = scalar_select %p1025_p6, 1, 0 }
  0x12   : > { %p1032_p8 = pnand %p623_p5, %p178_p7  ;;  %s1040_s30 = scalar_lea.hbm %s1268_s1, %s1030_s26 }
  0x13   : > { %s193_s6 = sshll.u32 %s952_s5, 4  ;;  %s1049_s9 = scalar_lea.hbm %s1269_s2, %s1030_s26  ;;  %s194_s6 = int_to_ptr.vmem [resolvable:$true] %s193_s6 }
  0x14   : > { %s1278_s27 = scalar_select %p1032_p8, 1, 0 }
  0x15   : > { %p666_p10 = pneg %p1032_p8  ;;  %s953_s11 = smov [#allocation7]  }
  0x16   : > { %s206_s12 = sshll.u32 %s953_s11, 4  ;;  %s742_s13 = scalar_lea.hbm %s1040_s30, 128  ;;  %s1057_s12 = int_to_ptr.vmem [resolvable:$true] %s206_s12 }
  0x17   : > { %p1053_p11 = pnand %p666_p10, %p1020_p4  ;;  %p743_p12 = scmp.ne.s32.totalorder %s1040_s30, %s742_s13 }
  0x18   : > { %s747_s21 = scalar_lea.hbm %s1268_s1, 256  ;;  %p748_p3 = scmp.lt.u32.totalorder %s1040_s30, %s1268_s1 }
  0x19   : > { %p744_p13 = pneg %p1053_p11  ;;  %p749_p5 = scmp.lt.u32.totalorder %s747_s21, %s742_s13 }
  0x1a   : > { %p751_p10 = scmp.lt.u32.totalorder %s742_s13, %s1040_s30 }
  0x1b   : > { %p745_p0 = pnand %p744_p13, %p743_p12  ;;  %p750_p7 = por %p749_p5, %p748_p3 }
  0x1d   : > { %p746_p1 = pneg %p745_p0  ;;  %p752_p9 = por %p751_p10, %p750_p7 }
  0x1f   : > { %p753_p6 = pnand %p752_p9, %p746_p1 }
  0x21   : > { %756 = shalt.err (!%p753_p6)
}
  0x22   : > { %s757_s29 = scalar_lea.vmem %s194_s6, 128  ;;  %p765_p8 = scmp.lt.s32.totalorder %s194_s6, %s194_s6 }
  0x23   : > { %p758_p4 = scmp.ne.s32.totalorder %s194_s6, %s757_s29  ;;  %p766_p2 = scmp.lt.s32.totalorder %s757_s29, %s757_s29 }
  0x25   : > { %p760_p12 = pnand %p758_p4, %p744_p13  ;;  %p767_p3 = por %p766_p2, %p765_p8 }
  0x27   : > { %p761_p0 = pneg %p760_p12 }
  0x29   : > { %p768_p5 = pnand %p767_p3, %p761_p0 }
  0x2b   : > { %771 = shalt.err (!%p768_p5)
}
  0x2c   : > { %669 = dma.hbm_to_vmem [thread:$0]  (!%p1053_p11), %s1040_s30, 128, %s194_s6, [#allocation6]  }
  0x2d   : > { %s772_s5 = scalar_lea.hbm %s1049_s9, 128  ;;  %s777_s11 = scalar_lea.hbm %s1269_s2, 256 }
  0x2e   : > { %p773_p6 = scmp.ne.s32.totalorder %s1049_s9, %s772_s5  ;;  %p778_p2 = scmp.lt.u32.totalorder %s1049_s9, %s1269_s2 }
  0x2f   : > { %p779_p8 = scmp.lt.u32.totalorder %s777_s11, %s772_s5  ;;  %p781_p7 = scmp.lt.u32.totalorder %s772_s5, %s1049_s9 }
  0x30   : > { %p775_p4 = pnand %p773_p6, %p744_p13 }
  0x31   : > { %p780_p1 = por %p779_p8, %p778_p2 }
  0x32   : > { %p776_p9 = pneg %p775_p4 }
  0x33   : > { %p782_p10 = por %p781_p7, %p780_p1 }
  0x35   : > { %p783_p12 = pnand %p782_p10, %p776_p9 }
  0x37   : > { %786 = shalt.err (!%p783_p12)
}
  0x38   : > { %s787_s30 = scalar_lea.vmem %s1057_s12, 128  ;;  %p795_p6 = scmp.lt.s32.totalorder %s1057_s12, %s1057_s12 }
  0x39   : > { %p788_p0 = scmp.ne.s32.totalorder %s1057_s12, %s787_s30  ;;  %p796_p4 = scmp.lt.s32.totalorder %s787_s30, %s787_s30 }
  0x3b   : > { %p790_p3 = pnand %p788_p0, %p744_p13  ;;  %p797_p2 = por %p796_p4, %p795_p6 }
  0x3d   : > { %p791_p5 = pneg %p790_p3 }
  0x3f   : > { %p798_p8 = pnand %p797_p2, %p791_p5 }
  0x41   : > { %801 = shalt.err (!%p798_p8)
}
  0x42   : > { %672 = dma.hbm_to_vmem [thread:$0]  (!%p1053_p11), %s1049_s9, 128, %s1057_s12, [#allocation6]  }
  0x43   : > { %s37_s6 = sadd.s32 1, %s946_s19  ;;  %s46_s18 = sadd.s32 1, %s938_s17 }
  0x44   : > { %p39_p13 = scmp.ge.s32.totalorder %s37_s6, 2  ;;  %p53_p9 = scmp.ne.s32.totalorder %s938_s17, %s934_s16 }
  0x45   : > { %p54_p1 = scmp.eq.s32.totalorder %s950_s20, 0  ;;  %p684_p7 = scmp.lt.s32.totalorder %s950_s20, 2 }
  0x46   : > { %s1293_s6 = smov (%p39_p13, %s37_s6), 0  ;;  %p1280_p12 = scmp.ne.s32.totalorder %s1275_s23, 0 }
  0x47   : > { %p55_p10 = por %p54_p1, %p53_p9  ;;  %s41_s21 = ssub.s32 %s946_s19, %s1293_s6 }
  0x48   : > { %p1114_p0 = por %p1280_p12, %p53_p9  ;;  %s217_s22 = sand.u32 1, %s938_s17  }
  0x49   : > { %p44_p3 = scmp.eq.s32.totalorder %s41_s21, 0  ;;  %s627_s9 = sshll.u32 %s217_s22, 3 }
  0x4a   : > { %s628_s12 = sshll.u32 %s946_s19, 7  ;;  %s221_s23 = scalar_lea.vmem [#allocation2], %s627_s9 }
  0x4b   : > { %s1123_s28 = scalar_select %p44_p3, %s938_s17, %s46_s18  }
  0x4c   : > { %s1128_s7 = scalar_lea.hbm %s1267_s0, %s628_s12  ;;  %s229_s8 = sshll.u32 %s221_s23, 4  ;;  %s1136_s8 = int_to_ptr.vmem [resolvable:$true] %s229_s8 }
  0x4d   : > { %p1132_p11 = pnand %p684_p7, %p55_p10  ;;  %s218_s13 = scalar_lea.sflag [#allocation3], %s217_s22 }
  0x4e   : > { %s802_s14 = scalar_lea.hbm %s1128_s7, 128  ;;  %s807_s21 = scalar_lea.hbm %s1267_s0, 256 }
  0x4f   : > { %p803_p5 = scmp.ne.s32.totalorder %s1128_s7, %s802_s14  ;;  %p804_p6 = pneg %p1132_p11 }
  0x50   : > { %p808_p8 = scmp.lt.u32.totalorder %s1128_s7, %s1267_s0  ;;  %p809_p13 = scmp.lt.u32.totalorder %s807_s21, %s802_s14 }
  0x51   : > { %p805_p4 = pnand %p804_p6, %p803_p5  ;;  %p811_p1 = scmp.lt.u32.totalorder %s802_s14, %s1128_s7 }
  0x52   : > { %p810_p9 = por %p809_p13, %p808_p8 }
  0x53   : > { %p806_p2 = pneg %p805_p4 }
  0x54   : > { %p812_p7 = por %p811_p1, %p810_p9 }
  0x56   : > { %p813_p10 = pnand %p812_p7, %p806_p2 }
  0x58   : > { %816 = shalt.err (!%p813_p10)
}
  0x59   : > { %s817_s22 = scalar_lea.vmem %s1136_s8, 128  ;;  %s954_s29 = smov [#allocation2]  }
  0x5a   : > { %p818_p12 = scmp.ne.s32.totalorder %s1136_s8, %s817_s22  ;;  %s822_s5 = sshll.u32 %s954_s29, 4  ;;  %s823_s5 = int_to_ptr.vmem [resolvable:$false] %s822_s5 }
  0x5b   : > { %s824_s23 = scalar_lea.vmem %s823_s5, 256  ;;  %p825_p4 = scmp.lt.s32.totalorder %s1136_s8, %s823_s5 }
  0x5c   : > { %p820_p3 = pnand %p818_p12, %p804_p6  ;;  %p826_p8 = scmp.lt.s32.totalorder %s824_s23, %s817_s22 }
  0x5e   : > { %p821_p5 = pneg %p820_p3  ;;  %p827_p13 = por %p826_p8, %p825_p4 }
  0x60   : > { %p828_p9 = pnand %p827_p13, %p821_p5 }
  0x62   : > { %831 = shalt.err (!%p828_p9)
}
  0x63   : > { %676 = dma.hbm_to_vmem [thread:$0]  (!%p1132_p11), %s1128_s7, 128, %s1136_s8, %s218_s13  }
  0x64   : > { %p1283_p2 = scmp.ne.s32.totalorder %s1278_s27, 0 }
  0x65   : > { %s1166_s14 = sand.u32 (!%p1283_p2), 1, %s934_s16   ;;  %p1284_p6 = scmp.ne.s32.totalorder (!%p1283_p2), %s1276_s24, 0 }
  0x66   : > { %238 = sbr.rel (%p1283_p2) target bundleno = 878 (0x36e), region = 32  ;;  %s1169_s30 = sshll.u32 (!%p1283_p2), %s1166_s14, 3 }
  0x67   : > { %s241_s18 = scalar_lea.sflag (!%p1283_p2), [#allocation3], %s1166_s14  ;;  %s244_s21 = scalar_lea.vmem (!%p1283_p2), [#allocation2], %s1169_s30 }
  0x6d   : > { %913 = dma.done.wait (%p1284_p6), %s241_s18, 128  }
  0x6e   : > { %915 = vsyncadd (%p1284_p6), %s241_s18, 4294967168 }
  0x6f   : > { %917 = dma.done.wait (%p1284_p6), [#allocation6], 256  }
  0x70   : > { %919 = vsyncadd (%p1284_p6), [#allocation6], 4294967040  ;;  %v955_v0 = vmov 0.0   ;;  %vm956_vm0 = vmmov 0   ;;  %vm285_vm1 = vcmask 261120   ;;  %v284_v1 = vld [vmem:[#allocation5] sm:$0xff]  ;;  %s1192_s11 = scalar_lea.hbm %s1271_s4, %s1030_s26 }
  0x71   : > { %646 = vmatprep.subr.mxu0 %v955_v0  ;;  %648 = vmatprep.mubr.msk.f32.mxu0 %vm956_vm0, %v955_v0  ;;  %v282_v2 = vld [vmem:[%s244_s21] sm:$0xff]  ;;  %vm362_vm2 = vcmask 64512   ;;  %v375_v12 = vld [vmem:[#allocation7] sm:$0xff]  ;;  %s281_s24 = scalar_lea.vmem [#allocation9], %s1169_s30  ;;  %s457_s13 = scalar_lea.sflag [#allocation10], %s1166_s14 }
  0x72   : > { %651 = vmatprep.subr.mxu1 %v955_v0  ;;  %653 = vmatprep.mubr.msk.f32.mxu1 %vm956_vm0, %v955_v0  ;;  %v283_v3 = vmul.f32 0.17677669, %v282_v2  ;;  %s485_s27 = sshll.u32 %s281_s24, 4  ;;  %s957_s12 = smov [#allocation9]   ;;  %s486_s27 = int_to_ptr.vmem [resolvable:$true] %s485_s27 }
  0x73   : > { %647 = vmatpush3.xpose.msk.msra.mxu0 %vm285_vm1, %v284_v1  ;;  %652 = vmatpush3.msra.mxu1 %v375_v12  ;;  %s832_s9 = scalar_lea.vmem %s486_s27, 128  ;;  %s836_s22 = sshll.u32 %s957_s12, 4  ;;  %s837_s22 = int_to_ptr.vmem [resolvable:$false] %s836_s22 }
  0x74   : > { %p833_p11 = scmp.ne.s32.totalorder %s486_s27, %s832_s9  ;;  %s838_s29 = scalar_lea.vmem %s837_s22, 256 }
  0x75   : > { %p839_p10 = scmp.lt.s32.totalorder %s486_s27, %s837_s22  ;;  %p840_p12 = scmp.lt.s32.totalorder %s838_s29, %s832_s9 }
  0x76   : > { %649 = vmatmul.mubr.msk.f32.vlgmr.msra.gmra.mrb[0].mxu0 %vm285_vm1, %v283_v3  ;;  %p834_p1 = pnand %p833_p11, %p1114_p0 }
  0x77   : > { %p841_p3 = por %p840_p12, %p839_p10 }
  0x78   : > { %p835_p7 = pneg %p834_p1 }
  0x7a   : > { %p842_p5 = pnand %p841_p3, %p835_p7 }
 0x149   : > { %v358_v4 = vpop.f32.mrb[0].mxu0 }
 0x14a   : > { %v650_v5 = vpop.f32.mrb[1].mxu0  ;;  %v363_v6 = vsel %vm362_vm2, %v358_v4, -inf }
 0x14b   : > { %364 = vmax.xlane.f32.xlu0 %v363_v6 }
 0x1d8   : > { %v365_v7 = vpop.xlane.xlu0 %364 }
 0x1d9   : > { %v366_v8 = vsub.f32 %v358_v4, %v365_v7 }
 0x1db   : > { %v367_v9 = vmul.f32 1.442695, %v366_v8 }
 0x1dd   : > { %738 = vpow2.f32 %v367_v9 }
 0x1e7   : > { %v739_v10 = vpop.eup %738 }
 0x1e8   : > { %v369_v11 = vsel %vm362_vm2, %v739_v10, 0.0 }
 0x1e9   : > { %370 = vadd.xlane.f32.xlu0 %v369_v11 }
 0x276   : > { %v371_v13 = vpop.xlane.xlu0 %370 }
 0x277   : > { %740 = vrcp.f32 %v371_v13 }
 0x281   : > { %v741_v14 = vpop.eup %740 }
 0x282   : > { %v373_v15 = vmul.f32 %v741_v14, %v739_v10 }
 0x284   : > { %374 = vst.msk [vmem:[%s281_s24] sm:$0xff] %vm362_vm2, %v373_v15 }
 0x28b   : > { %v376_v16 = vld [vmem:[%s281_s24] sm:$0xff] }
 0x28c   : > { %654 = vmatmul.mubr.msk.f32.vlgmr.msra.gmra.mrb[0].mxu1 %vm362_vm2, %v376_v16 }
 0x28d   : > { %845 = shalt.err (!%p842_p5)
}
 0x28e   : > { %s846_s5 = scalar_lea.hbm %s1192_s11, 128  ;;  %s850_s21 = scalar_lea.hbm %s1271_s4, 256 }
 0x28f   : > { %p847_p4 = scmp.ne.s32.totalorder %s1192_s11, %s846_s5  ;;  %p851_p9 = scmp.lt.u32.totalorder %s1192_s11, %s1271_s4 }
 0x290   : > { %p852_p2 = scmp.lt.u32.totalorder %s850_s21, %s846_s5  ;;  %p854_p11 = scmp.lt.u32.totalorder %s846_s5, %s1192_s11 }
 0x291   : > { %p848_p8 = pnand %p847_p4, %p1114_p0 }
 0x292   : > { %p853_p6 = por %p852_p2, %p851_p9 }
 0x293   : > { %p849_p13 = pneg %p848_p8 }
 0x294   : > { %p855_p1 = por %p854_p11, %p853_p6 }
 0x296   : > { %p856_p7 = pnand %p855_p1, %p849_p13 }
 0x298   : > { %859 = shalt.err (!%p856_p7)
}
 0x299   : > { %663 = dma.vmem_to_hbm [thread:$0]  (%p1114_p0), %s486_s27, 128, %s1192_s11, %s457_s13  }
 0x29a   : > { %s274_s8 = scalar_lea.vmem [#allocation8], %s1169_s30  ;;  %s1217_s29 = scalar_lea.hbm %s1270_s3, %s1030_s26 }
 0x29b   : > { %s471_s9 = sshll.u32 %s274_s8, 4  ;;  %s452_s5 = scalar_lea.sflag [#allocation4], %s1166_s14  ;;  %s1219_s9 = int_to_ptr.vmem [resolvable:$true] %s471_s9 }
 0x29c   : > { %s860_s23 = scalar_lea.vmem %s1219_s9, 128  ;;  %s958_s30 = smov [#allocation8]  }
 0x29d   : > { %p861_p10 = scmp.ne.s32.totalorder %s1219_s9, %s860_s23  ;;  %s864_s27 = sshll.u32 %s958_s30, 4  ;;  %s865_s27 = int_to_ptr.vmem [resolvable:$false] %s864_s27 }
 0x29e   : > { %s866_s26 = scalar_lea.vmem %s865_s27, 256  ;;  %p867_p5 = scmp.lt.s32.totalorder %s1219_s9, %s865_s27 }
 0x29f   : > { %p862_p12 = pnand %p861_p10, %p1114_p0  ;;  %p868_p4 = scmp.lt.s32.totalorder %s866_s26, %s860_s23 }
 0x2a1   : > { %p863_p3 = pneg %p862_p12  ;;  %p869_p8 = por %p868_p4, %p867_p5 }
 0x2a3   : > { %p870_p13 = pnand %p869_p8, %p863_p3 }
 0x35f   : > { %v446_v17 = vpop.f32.mrb[0].mxu1 }
 0x360   : > { %450 = vst.msk [vmem:[%s274_s8] sm:$0xff] %vm285_vm1, %v446_v17  ;;  %v655_v18 = vpop.f32.mrb[1].mxu1 }
 0x361   : > { %873 = shalt.err (!%p870_p13)
}
 0x362   : > { %s874_s14 = scalar_lea.hbm %s1217_s29, 128  ;;  %s878_s18 = scalar_lea.hbm %s1270_s3, 256 }
 0x363   : > { %p875_p9 = scmp.ne.s32.totalorder %s1217_s29, %s874_s14  ;;  %p879_p11 = scmp.lt.u32.totalorder %s1217_s29, %s1270_s3 }
 0x364   : > { %p880_p1 = scmp.lt.u32.totalorder %s878_s18, %s874_s14  ;;  %p882_p10 = scmp.lt.u32.totalorder %s874_s14, %s1217_s29 }
 0x365   : > { %p876_p2 = pnand %p875_p9, %p1114_p0 }
 0x366   : > { %p881_p7 = por %p880_p1, %p879_p11 }
 0x367   : > { %p877_p6 = pneg %p876_p2 }
 0x368   : > { %p883_p12 = por %p882_p10, %p881_p7 }
 0x36a   : > { %p884_p3 = pnand %p883_p12, %p877_p6 }
 0x36c   : > { %887 = shalt.err (!%p884_p3)
}
 0x36d   : > { %662 = dma.vmem_to_hbm [thread:$0]  (%p1114_p0), %s1219_s9, 128, %s1217_s29, %s452_s5  }
 0x36e PF: > { %s497_s7 = sand.u32 1, %s930_s15   ;;  %p1285_p5 = scmp.ne.s32.totalorder %s1277_s25, 0 }
 0x36f   : > { %p1286_p4 = scmp.ge.s32.totalorder %s950_s20, 2  ;;  %s498_s8 = scalar_lea.sflag [#allocation4], %s497_s7 }
 0x371   : > { %p678_p8 = pnand %p1286_p4, %p1285_p5 }
 0x373   : > { %921 = dma.done.wait (!%p678_p8), %s498_s8, 128  }
 0x374   : > { %923 = vsyncadd (!%p678_p8), %s498_s8, 4294967168  ;;  %s507_s12 = scalar_lea.sflag [#allocation10], %s497_s7 }
 0x375   : > { %925 = dma.done.wait (!%p678_p8), %s507_s12, 128  }
 0x376   : > { %927 = vsyncadd (!%p678_p8), %s507_s12, 4294967168  ;;  %s25_s20 = sadd.s32 1, %s950_s20   ;;  %s1287_s15 = smov %s934_s16 }
 0x377   : > { %p22_p13 = scmp.ge.s32.totalorder %s25_s20, 4   ;;  %s1288_s16 = smov %s938_s17 }
 0x378   : > { %s1289_s17 = smov %s1123_s28  ;;  %s1290_s18 = smov %s946_s19 }
 0x379   : > { %s1291_s19 = smov %s1293_s6  ;;  %24 = sbr.rel (!%p22_p13) target bundleno = 9 (0x9), region = 104 }
 0x380   :  { %512 = vsyncpa [#allocation3], 1 }
 0x381   :  { %514 = vsyncpa [#allocation3 + $0x1], 1 }
 0x382   :  { %515 = vsyncpa [#allocation6], 1 }
 0x383   :  { %516 = vsyncpa [#allocation4], 1 }
 0x384   :  { %518 = vsyncpa [#allocation4 + $0x1], 1 }
 0x385   :  { %519 = vsyncpa [#allocation10], 1 }
 0x386   :  { %521 = vsyncpa [#allocation10 + $0x1], 1 }

// kernel: tpu_custom_call.1
= control target key start
LH: loop header
LB: loop body
LE: loop exit
PB: predicated region body
PF: predicated region fallthrough
CT: control target
= control target key end

     0   :  { %s1336_s0 = inlined_call_operand.hbm [shape: f32[2,8,32], index: 0, kind: input, shape index: {}]   ;;  %s1337_s1 = inlined_call_operand.hbm [shape: f32[2,8,32], index: 1, kind: input, shape index: {}]   ;;  %s1338_s2 = inlined_call_operand.hbm [shape: f32[2,8,32], index: 2, kind: input, shape index: {}]   ;;  %s1339_s3 = inlined_call_operand.hbm [shape: f32[2,8,32], index: 3, kind: output, shape index: {0}]   ;;  %s1340_s4 = inlined_call_operand.hbm [shape: f32[2,8,8], index: 4, kind: output, shape index: {1}]  }
   0x1   :  { %1349 = sst [smem:[#allocation19_spill]] %s1337_s1 }
   0x2   :  { %10 = vsyncpa [#allocation3], 0 }
   0x3   :  { %12 = vsyncpa [#allocation3 + $0x1], 0 }
   0x4   :  { %13 = vsyncpa [#allocation6], 0 }
   0x5   :  { %15 = vsyncpa [#allocation6 + $0x1], 0 }
   0x6   :  { %16 = vsyncpa [#allocation4], 0 }
   0x7   :  { %18 = vsyncpa [#allocation4 + $0x1], 0 }
   0x8   :  { %19 = vsyncpa [#allocation10], 0 }
   0x9   :  { %21 = vsyncpa [#allocation10 + $0x1], 0  ;;  %s1037_s15 = smov 0   ;;  %s1039_s16 = smov 0  }
   0xa   :  { %s1041_s17 = smov 0   ;;  %s1043_s18 = smov 0  }
   0xb   :  { %s1045_s19 = smov 0   ;;  %s1047_s20 = smov 0  }
   0xc LB: > { %1350 = sst [smem:[#allocation15_spill]] %s999_s19  ;;  %s1068_s21 = sadd.s32 4294967295, %s1003_s20   ;;  %s1003_s20 = sphi %s1047_s20, %s27_s20   ;;  %s999_s19 = sphi %s1045_s19, %s1374_s19   ;;  %s995_s18 = sphi %s1043_s18, %s1373_s18   ;;  %s991_s17 = sphi %s1041_s17, %s1377_s17   ;;  %s987_s16 = sphi %s1039_s16, %s1376_s16   ;;  %s983_s15 = sphi %s1037_s15, %s1375_s15  }
   0xd   : > { %1351 = sst [smem:[#allocation16_spill]] %s1003_s20  ;;  %s674_s22 = sadd.s32 4294967294, %s1003_s20  }
   0xe   : > { %s39_s23 = sadd.s32 1, %s999_s19  ;;  %s48_s24 = sadd.s32 1, %s991_s17 }
   0xf   : > { %p41_p0 = scmp.ge.s32.totalorder %s39_s23, 2  ;;  %p55_p1 = scmp.ne.s32.totalorder %s991_s17, %s987_s16 }
  0x10   : > { %p56_p2 = scmp.eq.s32.totalorder %s1003_s20, 0  ;;  %p61_p3 = scmp.ne.s32.totalorder %s987_s16, %s983_s15 }
  0x11   : > { %s1379_s23 = smov (%p41_p0, %s39_s23), 0  ;;  %p62_p5 = scmp.eq.s32.totalorder %s1068_s21, 0 }
  0x12   : > { %1352 = sst [smem:[#allocation17_spill]] %s1379_s23  ;;  %p1080_p4 = por %p56_p2, %p55_p1 }
  0x13   : > { %s43_s26 = ssub.s32 %s999_s19, %s1379_s23  ;;  %p139_p6 = scmp.eq.s32.totalorder %s1068_s21, 1 }
  0x14   : > { %p46_p7 = scmp.eq.s32.totalorder %s43_s26, 0  ;;  %p1088_p8 = por %p62_p5, %p61_p3 }
  0x15   : > { %p1092_p9 = por %p139_p6, %p55_p1  ;;  %p145_p10 = scmp.eq.s32.totalorder %s674_s22, 1 }
  0x16   : > { %s1354_s27 = scalar_select %p1088_p8, 1, 0 }
  0x17   : > { %s1355_s28 = scalar_select %p1092_p9, 1, 0 }
  0x18   : > { %s1097_s29 = scalar_select %p46_p7, %s991_s17, %s48_s24  }
  0x19   : > { %p1099_p11 = por %p145_p10, %p61_p3  ;;  %p739_p13 = scmp.lt.s32.totalorder %s1003_s20, 2 }
  0x1a   : > { %1356 = sst [smem:[#allocation18_spill]] %s1097_s29  ;;  %s1341_s5 = sand.u32 1, %s991_s17  }
  0x1b   : > { %s1357_s30 = scalar_select %p1099_p11, 1, 0 }
  0x1c   : > { %s1108_s6 = sshll.u32 %s1341_s5, 3  ;;  %s1111_s7 = sshll.u32 %s999_s19, 7 }
  0x1d   : > { %p1115_p0 = pnand %p739_p13, %p1080_p4  ;;  %s212_s9 = sand.u32 1, %s1003_s20  }
  0x1e   : > { %s1359_s1 = sld [smem:[#allocation19_spill]]  ;;  %s216_s13 = scalar_lea.vmem [#allocation5], %s1108_s6 }
  0x1f   : > { %s1358_s8 = scalar_select %p1115_p0, 1, 0 }
  0x20   : > { %s223_s14 = sshll.u32 %s216_s13, 4  ;;  %s1131_s22 = scalar_lea.sflag [#allocation6], %s212_s9  ;;  %s1128_s14 = int_to_ptr.vmem [resolvable:$true] %s223_s14 }
  0x21   : > { %p1137_p4 = pneg %p1115_p0 }
  0x24   : > { %s1124_s12 = scalar_lea.hbm %s1359_s1, %s1111_s7  ;;  %s800_s11 = scalar_lea.hbm %s1359_s1, 256 }
  0x25   : > { %s795_s24 = scalar_lea.hbm %s1124_s12, 128  ;;  %p801_p7 = scmp.lt.u32.totalorder %s1124_s12, %s1359_s1 }
  0x26   : > { %p796_p3 = scmp.ne.s32.totalorder %s1124_s12, %s795_s24  ;;  %p802_p10 = scmp.lt.u32.totalorder %s800_s11, %s795_s24 }
  0x27   : > { %p804_p12 = scmp.lt.u32.totalorder %s795_s24, %s1124_s12 }
  0x28   : > { %p798_p5 = pnand %p1137_p4, %p796_p3  ;;  %p803_p13 = por %p802_p10, %p801_p7 }
  0x2a   : > { %p799_p6 = pneg %p798_p5  ;;  %p805_p1 = por %p804_p12, %p803_p13 }
  0x2c   : > { %p806_p2 = pnand %p805_p1, %p799_p6 }
  0x2e   : > { %809 = shalt.err (!%p806_p2)
}
  0x2f   : > { %s810_s9 = scalar_lea.vmem %s1128_s14, 128  ;;  %s1005_s26 = smov [#allocation5]  }
  0x30   : > { %p811_p3 = scmp.ne.s32.totalorder %s1128_s14, %s810_s9  ;;  %s815_s10 = sshll.u32 %s1005_s26, 4  ;;  %s816_s10 = int_to_ptr.vmem [resolvable:$false] %s815_s10 }
  0x31   : > { %s817_s5 = scalar_lea.vmem %s816_s10, 256  ;;  %p818_p9 = scmp.lt.s32.totalorder %s1128_s14, %s816_s10 }
  0x32   : > { %p813_p5 = pnand %p811_p3, %p1137_p4  ;;  %p819_p8 = scmp.lt.s32.totalorder %s817_s5, %s810_s9 }
  0x34   : > { %p814_p11 = pneg %p813_p5  ;;  %p820_p7 = por %p819_p8, %p818_p9 }
  0x36   : > { %p821_p10 = pnand %p820_p7, %p814_p11 }
  0x38   : > { %824 = shalt.err (!%p821_p10)
}
  0x39   : > { %728 = dma.hbm_to_vmem [thread:$0]  (!%p1115_p0), %s1124_s12, 128, %s1128_s14, %s1131_s22  }
  0x3a   : > { %p1361_p12 = scmp.lt.s32.totalorder %s1003_s20, 3  ;;  %p1362_p1 = scmp.ge.s32.totalorder %s1003_s20, 1 }
  0x3b   : > { %s1173_s9 = scalar_lea.hbm %s1336_s0, %s1111_s7  ;;  %s197_s26 = scalar_lea.vmem [#allocation2], %s1108_s6 }
  0x3c   : > { %p1165_p2 = pnand %p1362_p1, %p1361_p12  ;;  %s205_s10 = sshll.u32 %s197_s26, 4  ;;  %s1176_s10 = int_to_ptr.vmem [resolvable:$true] %s205_s10 }
  0x3d   : > { %s1182_s5 = scalar_lea.hbm %s1338_s2, %s1111_s7  ;;  %s1364_s1 = sand.u32 1, %s991_s17  }
  0x3e   : > { %s1363_s24 = scalar_select %p1165_p2, 1, 0 }
  0x3f   : > { %s194_s23 = scalar_lea.sflag [#allocation3], %s1364_s1  ;;  %s825_s19 = scalar_lea.hbm %s1173_s9, 128 }
  0x40   : > { %p826_p8 = scmp.ne.s32.totalorder %s1173_s9, %s825_s19  ;;  %s830_s29 = scalar_lea.hbm %s1336_s0, 256 }
  0x41   : > { %p831_p6 = scmp.lt.u32.totalorder %s1173_s9, %s1336_s0  ;;  %p832_p13 = scmp.lt.u32.totalorder %s830_s29, %s825_s19 }
  0x42   : > { %p828_p9 = pnand %p826_p8, %p1137_p4  ;;  %p834_p5 = scmp.lt.u32.totalorder %s825_s19, %s1173_s9 }
  0x43   : > { %p833_p3 = por %p832_p13, %p831_p6 }
  0x44   : > { %p829_p11 = pneg %p828_p9 }
  0x45   : > { %p835_p7 = por %p834_p5, %p833_p3 }
  0x47   : > { %p836_p10 = pnand %p835_p7, %p829_p11 }
  0x49   : > { %839 = shalt.err (!%p836_p10)
}
  0x4a   : > { %s840_s1 = scalar_lea.vmem %s1176_s10, 128  ;;  %s1006_s7 = smov [#allocation2]  }
  0x4b   : > { %p841_p12 = scmp.ne.s32.totalorder %s1176_s10, %s840_s1  ;;  %s845_s12 = sshll.u32 %s1006_s7, 4  ;;  %s846_s12 = int_to_ptr.vmem [resolvable:$false] %s845_s12 }
  0x4c   : > { %s847_s20 = scalar_lea.vmem %s846_s12, 256  ;;  %p848_p9 = scmp.lt.s32.totalorder %s1176_s10, %s846_s12 }
  0x4d   : > { %p843_p1 = pnand %p841_p12, %p1137_p4  ;;  %p849_p2 = scmp.lt.s32.totalorder %s847_s20, %s840_s1 }
  0x4f   : > { %p844_p8 = pneg %p843_p1  ;;  %p850_p6 = por %p849_p2, %p848_p9 }
  0x51   : > { %p851_p13 = pnand %p850_p6, %p844_p8 }
  0x53   : > { %854 = shalt.err (!%p851_p13)
}
  0x54   : > { %725 = dma.hbm_to_vmem [thread:$0]  (!%p1115_p0), %s1173_s9, 128, %s1176_s10, %s194_s23  }
  0x55   : > { %s234_s19 = scalar_lea.vmem [#allocation7], %s1108_s6  ;;  %s855_s14 = scalar_lea.hbm %s1182_s5, 128 }
  0x56   : > { %s241_s29 = sshll.u32 %s234_s19, 4  ;;  %p856_p11 = scmp.ne.s32.totalorder %s1182_s5, %s855_s14  ;;  %s242_s29 = int_to_ptr.vmem [resolvable:$true] %s241_s29 }
  0x57   : > { %s860_s26 = scalar_lea.hbm %s1338_s2, 256  ;;  %p861_p5 = scmp.lt.u32.totalorder %s1182_s5, %s1338_s2 }
  0x58   : > { %p858_p2 = pnand %p856_p11, %p1137_p4  ;;  %p862_p7 = scmp.lt.u32.totalorder %s860_s26, %s855_s14 }
  0x59   : > { %p864_p12 = scmp.lt.u32.totalorder %s855_s14, %s1182_s5 }
  0x5a   : > { %p859_p3 = pneg %p858_p2  ;;  %p863_p10 = por %p862_p7, %p861_p5 }
  0x5c   : > { %p865_p1 = por %p864_p12, %p863_p10 }
  0x5e   : > { %p866_p8 = pnand %p865_p1, %p859_p3 }
  0x60   : > { %869 = shalt.err (!%p866_p8)
}
  0x61   : > { %s870_s23 = scalar_lea.vmem %s242_s29, 128  ;;  %s1007_s6 = smov [#allocation7]  }
  0x62   : > { %p871_p9 = scmp.ne.s32.totalorder %s242_s29, %s870_s23  ;;  %s875_s9 = sshll.u32 %s1007_s6, 4  ;;  %s876_s9 = int_to_ptr.vmem [resolvable:$false] %s875_s9 }
  0x63   : > { %s877_s10 = scalar_lea.vmem %s876_s9, 256  ;;  %p878_p11 = scmp.lt.s32.totalorder %s242_s29, %s876_s9 }
  0x64   : > { %p873_p6 = pnand %p871_p9, %p1137_p4  ;;  %p879_p2 = scmp.lt.s32.totalorder %s877_s10, %s870_s23 }
  0x66   : > { %p874_p13 = pneg %p873_p6  ;;  %p880_p0 = por %p879_p2, %p878_p11 }
  0x68   : > { %p881_p5 = pnand %p880_p0, %p874_p13 }
  0x6a   : > { %884 = shalt.err (!%p881_p5)
}
  0x6b   : > { %p1365_p7 = scmp.ne.s32.totalorder %s1358_s8, 0  ;;  %p1366_p3 = scmp.ne.s32.totalorder %s1363_s24, 0 }
  0x6c   : > { %s1229_s25 = sand.u32 (!%p1366_p3), 1, %s987_s16   ;;  %p1367_p0 = scmp.ne.s32.totalorder (!%p1366_p3), %s1354_s27, 0 }
  0x6d   : > { %731 = dma.hbm_to_vmem [thread:$0]  (!%p1365_p7), %s1182_s5, 128, %s242_s29, %s1131_s22  }
  0x6e   : > { %250 = sbr.rel (%p1366_p3) target bundleno = 887 (0x377), region = 32  ;;  %s1232_s12 = sshll.u32 (!%p1366_p3), %s1229_s25, 3 }
  0x6f   : > { %s253_s20 = scalar_lea.sflag (!%p1366_p3), [#allocation3], %s1229_s25  ;;  %s256_s19 = scalar_lea.vmem (!%p1366_p3), [#allocation2], %s1232_s12 }
  0x75   : > { %966 = dma.done.wait (%p1367_p0), %s253_s20, 128  }
  0x76   : > { %968 = vsyncadd (%p1367_p0), %s253_s20, 4294967168  ;;  %s261_s8 = sand.u32 1, %s1068_s21   ;;  %s265_s24 = scalar_lea.vmem [#allocation5], %s1232_s12 }
  0x77   : > { %s262_s22 = scalar_lea.sflag [#allocation6], %s261_s8 }
  0x78   : > { %970 = dma.done.wait (%p1367_p0), %s262_s22, 256  }
  0x79   : > { %972 = vsyncadd (%p1367_p0), %s262_s22, 4294967040  ;;  %v1008_v0 = vmov 0.0   ;;  %vm1009_vm0 = vmmov 0   ;;  %vm317_vm1 = vcmask 261120   ;;  %v316_v1 = vld [vmem:[%s265_s24] sm:$0xff]  ;;  %v314_v2 = vld [vmem:[%s256_s19] sm:$0xff] }
  0x7a   : > { %702 = vmatprep.subr.mxu0 %v1008_v0  ;;  %704 = vmatprep.mubr.msk.f32.mxu0 %vm1009_vm0, %v1008_v0  ;;  %v315_v3 = vmul.f32 0.17677669, %v314_v2  ;;  %vm394_vm2 = vcmask 64512   ;;  %s274_s21 = scalar_lea.vmem [#allocation7], %s1232_s12  ;;  %s313_s27 = scalar_lea.vmem [#allocation9], %s1232_s12 }
  0x7b   : > { %707 = vmatprep.subr.mxu1 %v1008_v0  ;;  %709 = vmatprep.mubr.msk.f32.mxu1 %vm1009_vm0, %v1008_v0  ;;  %v407_v12 = vld [vmem:[%s274_s21] sm:$0xff]  ;;  %s694_s5 = sshll.u32 %s995_s18, 7  ;;  %s517_s13 = sshll.u32 %s313_s27, 4  ;;  %s518_s13 = int_to_ptr.vmem [resolvable:$true] %s517_s13 }
  0x7c   : > { %703 = vmatpush3.xpose.msk.msra.mxu0 %vm317_vm1, %v316_v1  ;;  %708 = vmatpush3.msra.mxu1 %v407_v12  ;;  %s1260_s11 = scalar_lea.hbm %s1340_s4, %s694_s5  ;;  %s489_s26 = scalar_lea.sflag [#allocation10], %s1229_s25 }
  0x7d   : > { %s885_s1 = scalar_lea.vmem %s518_s13, 128  ;;  %p1368_p10 = scmp.ne.s32.totalorder %s1355_s28, 0 }
  0x7e   : > { %p886_p4 = scmp.ne.s32.totalorder %s518_s13, %s885_s1  ;;  %s1010_s7 = smov [#allocation9]  }
  0x7f   : > { %705 = vmatmul.mubr.msk.f32.vlgmr.msra.gmra.mrb[0].mxu0 %vm317_vm1, %v315_v3  ;;  %s889_s23 = sshll.u32 %s1010_s7, 4  ;;  %s890_s23 = int_to_ptr.vmem [resolvable:$false] %s889_s23 }
  0x80   : > { %p887_p12 = pnand %p886_p4, %p1368_p10  ;;  %s891_s6 = scalar_lea.vmem %s890_s23, 256 }
  0x81   : > { %p892_p8 = scmp.lt.s32.totalorder %s518_s13, %s890_s23  ;;  %p893_p9 = scmp.lt.s32.totalorder %s891_s6, %s885_s1 }
  0x82   : > { %p888_p1 = pneg %p887_p12 }
  0x83   : > { %p894_p6 = por %p893_p9, %p892_p8 }
  0x85   : > { %p895_p13 = pnand %p894_p6, %p888_p1 }
 0x152   : > { %v390_v4 = vpop.f32.mrb[0].mxu0 }
 0x153   : > { %v706_v5 = vpop.f32.mrb[1].mxu0  ;;  %v395_v6 = vsel %vm394_vm2, %v390_v4, -inf }
 0x154   : > { %396 = vmax.xlane.f32.xlu0 %v395_v6 }
 0x1e1   : > { %v397_v7 = vpop.xlane.xlu0 %396 }
 0x1e2   : > { %v398_v8 = vsub.f32 %v390_v4, %v397_v7 }
 0x1e4   : > { %v399_v9 = vmul.f32 1.442695, %v398_v8 }
 0x1e6   : > { %791 = vpow2.f32 %v399_v9 }
 0x1f0   : > { %v792_v10 = vpop.eup %791 }
 0x1f1   : > { %v401_v11 = vsel %vm394_vm2, %v792_v10, 0.0 }
 0x1f2   : > { %402 = vadd.xlane.f32.xlu0 %v401_v11 }
 0x27f   : > { %v403_v13 = vpop.xlane.xlu0 %402 }
 0x280   : > { %793 = vrcp.f32 %v403_v13 }
 0x28a   : > { %v794_v14 = vpop.eup %793 }
 0x28b   : > { %v405_v15 = vmul.f32 %v794_v14, %v792_v10 }
 0x28d   : > { %406 = vst.msk [vmem:[%s313_s27] sm:$0xff] %vm394_vm2, %v405_v15 }
 0x294   : > { %v408_v16 = vld [vmem:[%s313_s27] sm:$0xff] }
 0x295   : > { %710 = vmatmul.mubr.msk.f32.vlgmr.msra.gmra.mrb[0].mxu1 %vm394_vm2, %v408_v16 }
 0x296   : > { %898 = shalt.err (!%p895_p13)
}
 0x297   : > { %s899_s9 = scalar_lea.hbm %s1260_s11, 128  ;;  %s903_s19 = scalar_lea.hbm %s1340_s4, 256 }
 0x298   : > { %p900_p11 = scmp.ne.s32.totalorder %s1260_s11, %s899_s9  ;;  %p904_p7 = scmp.lt.u32.totalorder %s1260_s11, %s1340_s4 }
 0x299   : > { %p905_p3 = scmp.lt.u32.totalorder %s903_s19, %s899_s9  ;;  %p907_p4 = scmp.lt.u32.totalorder %s899_s9, %s1260_s11 }
 0x29a   : > { %p901_p2 = pnand %p900_p11, %p1368_p10 }
 0x29b   : > { %p906_p0 = por %p905_p3, %p904_p7 }
 0x29c   : > { %p902_p5 = pneg %p901_p2 }
 0x29d   : > { %p908_p12 = por %p907_p4, %p906_p0 }
 0x29f   : > { %p909_p1 = pnand %p908_p12, %p902_p5 }
 0x2a1   : > { %912 = shalt.err (!%p909_p1)
}
 0x2a2   : > { %719 = dma.vmem_to_hbm [thread:$0]  (%p1368_p10), %s518_s13, 128, %s1260_s11, %s489_s26  }
 0x2a3   : > { %s306_s24 = scalar_lea.vmem [#allocation8], %s1232_s12  ;;  %s1286_s14 = scalar_lea.hbm %s1339_s3, %s694_s5 }
 0x2a4   : > { %s503_s21 = sshll.u32 %s306_s24, 4  ;;  %s484_s1 = scalar_lea.sflag [#allocation4], %s1229_s25  ;;  %s1288_s21 = int_to_ptr.vmem [resolvable:$true] %s503_s21 }
 0x2a5   : > { %s913_s7 = scalar_lea.vmem %s1288_s21, 128  ;;  %s1011_s18 = smov [#allocation8]  }
 0x2a6   : > { %p914_p8 = scmp.ne.s32.totalorder %s1288_s21, %s913_s7  ;;  %s917_s12 = sshll.u32 %s1011_s18, 4  ;;  %s918_s12 = int_to_ptr.vmem [resolvable:$false] %s917_s12 }
 0x2a7   : > { %s919_s5 = scalar_lea.vmem %s918_s12, 256  ;;  %p920_p13 = scmp.lt.s32.totalorder %s1288_s21, %s918_s12 }
 0x2a8   : > { %p915_p9 = pnand %p914_p8, %p1368_p10  ;;  %p921_p11 = scmp.lt.s32.totalorder %s919_s5, %s913_s7 }
 0x2aa   : > { %p916_p6 = pneg %p915_p9  ;;  %p922_p2 = por %p921_p11, %p920_p13 }
 0x2ac   : > { %p923_p5 = pnand %p922_p2, %p916_p6 }
 0x368   : > { %v478_v17 = vpop.f32.mrb[0].mxu1 }
 0x369   : > { %482 = vst.msk [vmem:[%s306_s24] sm:$0xff] %vm317_vm1, %v478_v17  ;;  %v711_v18 = vpop.f32.mrb[1].mxu1 }
 0x36a   : > { %926 = shalt.err (!%p923_p5)
}
 0x36b   : > { %s927_s25 = scalar_lea.hbm %s1286_s14, 128  ;;  %s931_s26 = scalar_lea.hbm %s1339_s3, 256 }
 0x36c   : > { %p928_p7 = scmp.ne.s32.totalorder %s1286_s14, %s927_s25  ;;  %p932_p4 = scmp.lt.u32.totalorder %s1286_s14, %s1339_s3 }
 0x36d   : > { %p933_p12 = scmp.lt.u32.totalorder %s931_s26, %s927_s25  ;;  %p935_p8 = scmp.lt.u32.totalorder %s927_s25, %s1286_s14 }
 0x36e   : > { %p929_p3 = pnand %p928_p7, %p1368_p10 }
 0x36f   : > { %p934_p1 = por %p933_p12, %p932_p4 }
 0x370   : > { %p930_p0 = pneg %p929_p3 }
 0x371   : > { %p936_p9 = por %p935_p8, %p934_p1 }
 0x373   : > { %p937_p6 = pnand %p936_p9, %p930_p0 }
 0x375   : > { %940 = shalt.err (!%p937_p6)
}
 0x376   : > { %718 = dma.vmem_to_hbm [thread:$0]  (%p1368_p10), %s1288_s21, 128, %s1286_s14, %s484_s1  }
 0x377 PF: > { %s1369_s9 = sld [smem:[#allocation16_spill]]  ;;  %s529_s10 = sand.u32 1, %s983_s15  }
 0x378   : > { %p1370_p13 = scmp.ne.s32.totalorder %s1357_s30, 0  ;;  %s530_s20 = scalar_lea.sflag [#allocation4], %s529_s10 }
 0x37d   : > { %p1371_p11 = scmp.ge.s32.totalorder %s1369_s9, 2 }
 0x37f   : > { %p733_p2 = pnand %p1371_p11, %p1370_p13 }
 0x381   : > { %974 = dma.done.wait (!%p733_p2), %s530_s20, 128  }
 0x382   : > { %976 = vsyncadd (!%p733_p2), %s530_s20, 4294967168  ;;  %s539_s19 = scalar_lea.sflag [#allocation10], %s529_s10 }
 0x383   : > { %978 = dma.done.wait (!%p733_p2), %s539_s19, 128  }
 0x384   : > { %980 = vsyncadd (!%p733_p2), %s539_s19, 4294967168  ;;  %s27_s20 = sadd.s32 1, %s1369_s9   ;;  %s1372_s28 = sld [smem:[#allocation18_spill]] }
 0x385   : > { %p24_p5 = scmp.ge.s32.totalorder %s27_s20, 4   ;;  %s1373_s18 = sld [smem:[#allocation15_spill]] }
 0x386   : > { %s1374_s19 = sld [smem:[#allocation17_spill]]  ;;  %s1375_s15 = smov %s987_s16 }
 0x387   : > { %s1376_s16 = smov %s991_s17  ;;  %26 = sbr.rel (!%p24_p5) target bundleno = 12 (0xc), region = 118 }
 0x38a   : > { %s1377_s17 = smov %s1372_s28 }
 0x38e   :  { %544 = vsyncpa [#allocation3], 1 }
 0x38f   :  { %546 = vsyncpa [#allocation3 + $0x1], 1 }
 0x390   :  { %547 = vsyncpa [#allocation6], 1 }
 0x391   :  { %549 = vsyncpa [#allocation6 + $0x1], 1 }
 0x392   :  { %550 = vsyncpa [#allocation4], 1 }
 0x393   :  { %552 = vsyncpa [#allocation4 + $0x1], 1 }
 0x394   :  { %553 = vsyncpa [#allocation10], 1 }
 0x395   :  { %555 = vsyncpa [#allocation10 + $0x1], 1 }

</bundles_post_ra>
